<compile_context>
chip_gen: v5e
topology: v5e:2x2
jax: 0.10.0
libtpu: 0.0.40
codegen_flags: <defaults>
</compile_context>

<pallas_src>
from functools import partial

import jax
import jax.numpy as jnp
from jax.experimental import pallas as pl
from jax.experimental.pallas import tpu as pltpu

_LANE = 128
_SUB = 8


def _relu_models_kernel(x_ref, m_ref, b_ref, o_ref):
    # x_ref: (F, Nb, Gb)    x[f, n, g]
    # m_ref: (F*F, Gb)      m[f_in*F + f_out, g] = (W^T W)[f_in, f_out] of model g
    # b_ref: (F, Gb)        b[f, g]
    # o_ref: (F, Nb, Gb)
    Fs = o_ref.shape[0]
    m = m_ref[...]                                  # (F*F, Gb) tiny
    bb = b_ref[...]                                 # (F, Gb)   tiny
    for f_out in range(Fs):                         # static unroll (F == 2)
        acc = None
        for f_in in range(Fs):
            idx = f_in * Fs + f_out
            # (Nb, Gb) * (1, Gb): per-model scalar, sublane-broadcast over samples.
            term = x_ref[f_in] * m[idx:idx + 1, :]
            acc = term if acc is None else acc + term
        y = acc + bb[f_out:f_out + 1, :]
        o_ref[f_out] = jnp.maximum(y, 0.0).astype(o_ref.dtype)


@partial(jax.jit, static_argnames=("lane_block", "sublane_block"))
def parallel_relu_models(x, W, b, *, lane_block=1024, sublane_block=512):
    A, D, I, N, Fs = x.shape
    K = W.shape[-2]
    G = A * D * I

    # ---- tiny per-model precompute (G*F*F floats, done once by XLA) ----
    Wg = W.reshape(G, K, Fs)
    M = jnp.einsum('gkf,gke->gfe', Wg, Wg)          # M = W^T W per model: (G, F, F)
    mT = M.reshape(G, Fs * Fs).T                    # (F*F, G)
    bT = b.reshape(G, Fs).T                         # (F, G)

    # ---- single big layout transpose: (G, N, F) -> (F, N, G) ----
    xT = jnp.transpose(x.reshape(G, N, Fs), (2, 1, 0))

    # ---- block selection ----
    # Lane (model) axis: full extent in one block if it fits, else multiple of 128.
    if G <= lane_block:
        Gb, Gp = G, G
    else:
        Gb = max((lane_block // _LANE) * _LANE, _LANE)
        Gp = pl.cdiv(G, Gb) * Gb
    # Sublane (sample) axis: full extent in one block if it fits, else multiple of 8.
    if N <= sublane_block:
        Nb, Np = N, N
    else:
        Nb = max((sublane_block // _SUB) * _SUB, _SUB)
        Np = pl.cdiv(N, Nb) * Nb

    # Pad only when an axis is actually tiled and does not divide the block.
    if Gp != G:
        xT = jnp.pad(xT, ((0, 0), (0, 0), (0, Gp - G)))
        mT = jnp.pad(mT, ((0, 0), (0, Gp - G)))
        bT = jnp.pad(bT, ((0, 0), (0, Gp - G)))
    if Np != N:
        xT = jnp.pad(xT, ((0, 0), (0, Np - N), (0, 0)))

    # ---- VMEM budget: double-buffered block bytes + headroom, capped for v7x ----
    itemsize = jnp.dtype(x.dtype).itemsize
    blk_bytes = (2 * Fs * Nb * Gb + (Fs * Fs + Fs) * Gb) * itemsize
    vmem_limit = int(min(max(2 * blk_bytes + (8 << 20), 32 << 20), 56 << 20))

    out = pl.pallas_call(
        _relu_models_kernel,
        out_shape=jax.ShapeDtypeStruct((Fs, Np, Gp), x.dtype),
        grid=(Gp // Gb, Np // Nb),
        in_specs=[
            pl.BlockSpec((Fs, Nb, Gb), lambda i, j: (0, j, i)),
            pl.BlockSpec((Fs * Fs, Gb), lambda i, j: (0, i)),
            pl.BlockSpec((Fs, Gb), lambda i, j: (0, i)),
        ],
        out_specs=pl.BlockSpec((Fs, Nb, Gb), lambda i, j: (0, j, i)),
        compiler_params=pltpu.CompilerParams(
            dimension_semantics=("parallel", "parallel"),
            vmem_limit_bytes=vmem_limit,
        ),
    )(xT, mT, bT)

    # (F, Np, Gp) -> (F, N, G) -> (G, N, F) -> (A, D, I, N, F)
    out = jnp.transpose(out[:, :N, :G], (2, 1, 0))
    return out.reshape(A, D, I, N, Fs)


if __name__ == "__main__":
    # Module constants from the reference file + small chosen extents.
    averaging_dims = 4
    density_dims = 3
    importance_dims = 5
    feature_size = 2
    activation_size = 1
    n_samples = 8

    key = jax.random.PRNGKey(0)
    kw, kx = jax.random.split(key)

    # Deterministic synthetic weights: xavier_normal-style std for the 5-D tensor
    # (fan_in = size(1)*prod(shape[2:]), fan_out = size(0)*prod(shape[2:]) as in torch).
    receptive = importance_dims * activation_size * feature_size
    fan_in = density_dims * receptive
    fan_out = averaging_dims * receptive
    std = (2.0 / (fan_in + fan_out)) ** 0.5
    W = std * jax.random.normal(
        kw,
        (averaging_dims, density_dims, importance_dims, activation_size, feature_size),
        dtype=jnp.float32)
    b = jnp.zeros(
        (averaging_dims, density_dims, importance_dims, feature_size), jnp.float32)
    x = jax.random.normal(
        kx,
        (averaging_dims, density_dims, importance_dims, n_samples, feature_size),
        dtype=jnp.float32)

    out = parallel_relu_models(x, W, b)
    out = jax.block_until_ready(out)

    # Pure-JAX reference of the PyTorch forward.
    h_ref = jnp.einsum('adinf,adikf->adink', x, W)            # x @ W^T
    y_ref = jnp.einsum('adink,adikf->adinf', h_ref, W)        # ... @ W
    ref = jax.nn.relu(y_ref + b[..., None, :])                # + b.unsqueeze(3), relu

    assert out.shape == x.shape
    assert jnp.allclose(out, ref, atol=1e-5, rtol=1e-5)
    print("KERNEL_OK")
</pallas_src>

<mosaic_0001>
module attributes {stable_mosaic.version = 11 : i64} {
  func.func @_relu_models_kernel(%arg0: i32, %arg1: i32, %arg2: memref<2x8x60xf32, #tpu.memory_space<vmem>>, %arg3: memref<4x60xf32, #tpu.memory_space<vmem>>, %arg4: memref<2x60xf32, #tpu.memory_space<vmem>>, %arg5: memref<2x8x60xf32, #tpu.memory_space<vmem>>) attributes {dimension_semantics = [#tpu.dimension_semantics<parallel>, #tpu.dimension_semantics<parallel>], iteration_bounds = array<i64: 1, 1>, scalar_prefetch = 0 : i64, scratch_operands = 0 : i64, tpu.core_type = #tpu.core_type<tc>, window_params = [{transform_indices = @transform_0, window_bounds = array<i64: 2, 8, 60>}, {transform_indices = @transform_1, window_bounds = array<i64: 4, 60>}, {transform_indices = @transform_2, window_bounds = array<i64: 2, 60>}, {transform_indices = @transform_3, window_bounds = array<i64: 2, 8, 60>}]} {
    %c0 = arith.constant 0 : index
    %c0_0 = arith.constant 0 : index
    %0 = vector.load %arg3[%c0, %c0_0] : memref<4x60xf32, #tpu.memory_space<vmem>>, vector<4x60xf32>
    %c0_1 = arith.constant 0 : index
    %c0_2 = arith.constant 0 : index
    %1 = vector.load %arg4[%c0_1, %c0_2] : memref<2x60xf32, #tpu.memory_space<vmem>>, vector<2x60xf32>
    %c0_3 = arith.constant 0 : index
    %c0_4 = arith.constant 0 : index
    %c0_5 = arith.constant 0 : index
    %2 = vector.load %arg2[%c0_3, %c0_4, %c0_5] : memref<2x8x60xf32, #tpu.memory_space<vmem>>, vector<1x8x60xf32>
    %3 = vector.shape_cast %2 : vector<1x8x60xf32> to vector<8x60xf32>
    %4 = vector.extract_strided_slice %0 {offsets = [0, 0], sizes = [1, 60], strides = [1, 1]} : vector<4x60xf32> to vector<1x60xf32>
    %5 = vector.broadcast %4 : vector<1x60xf32> to vector<8x60xf32>
    %6 = arith.mulf %3, %5 : vector<8x60xf32>
    %c1 = arith.constant 1 : index
    %c0_6 = arith.constant 0 : index
    %c0_7 = arith.constant 0 : index
    %7 = vector.load %arg2[%c1, %c0_6, %c0_7] : memref<2x8x60xf32, #tpu.memory_space<vmem>>, vector<1x8x60xf32>
    %8 = vector.shape_cast %7 : vector<1x8x60xf32> to vector<8x60xf32>
    %9 = vector.extract_strided_slice %0 {offsets = [2, 0], sizes = [1, 60], strides = [1, 1]} : vector<4x60xf32> to vector<1x60xf32>
    %10 = vector.broadcast %9 : vector<1x60xf32> to vector<8x60xf32>
    %11 = arith.mulf %8, %10 : vector<8x60xf32>
    %12 = arith.addf %6, %11 : vector<8x60xf32>
    %13 = vector.extract_strided_slice %1 {offsets = [0, 0], sizes = [1, 60], strides = [1, 1]} : vector<2x60xf32> to vector<1x60xf32>
    %14 = vector.broadcast %13 : vector<1x60xf32> to vector<8x60xf32>
    %15 = arith.addf %12, %14 : vector<8x60xf32>
    %cst = arith.constant 0.000000e+00 : f32
    %16 = vector.broadcast %cst : f32 to vector<8x60xf32>
    %17 = arith.maximumf %15, %16 : vector<8x60xf32>
    %c0_8 = arith.constant 0 : index
    %c0_9 = arith.constant 0 : index
    %c0_10 = arith.constant 0 : index
    %18 = vector.load %arg5[%c0_8, %c0_9, %c0_10] : memref<2x8x60xf32, #tpu.memory_space<vmem>>, vector<1x8x60xf32>
    %19 = vector.shape_cast %18 : vector<1x8x60xf32> to vector<8x60xf32>
    %20 = vector.shape_cast %17 : vector<8x60xf32> to vector<1x8x60xf32>
    tpu.vector_store %arg5[%c0_8, %c0_9, %c0_10], %20 {strides = array<i32>} : memref<2x8x60xf32, #tpu.memory_space<vmem>>, vector<1x8x60xf32>,
    %c0_11 = arith.constant 0 : index
    %c0_12 = arith.constant 0 : index
    %c0_13 = arith.constant 0 : index
    %21 = vector.load %arg2[%c0_11, %c0_12, %c0_13] : memref<2x8x60xf32, #tpu.memory_space<vmem>>, vector<1x8x60xf32>
    %22 = vector.shape_cast %21 : vector<1x8x60xf32> to vector<8x60xf32>
    %23 = vector.extract_strided_slice %0 {offsets = [1, 0], sizes = [1, 60], strides = [1, 1]} : vector<4x60xf32> to vector<1x60xf32>
    %24 = vector.broadcast %23 : vector<1x60xf32> to vector<8x60xf32>
    %25 = arith.mulf %22, %24 : vector<8x60xf32>
    %c1_14 = arith.constant 1 : index
    %c0_15 = arith.constant 0 : index
    %c0_16 = arith.constant 0 : index
    %26 = vector.load %arg2[%c1_14, %c0_15, %c0_16] : memref<2x8x60xf32, #tpu.memory_space<vmem>>, vector<1x8x60xf32>
    %27 = vector.shape_cast %26 : vector<1x8x60xf32> to vector<8x60xf32>
    %28 = vector.extract_strided_slice %0 {offsets = [3, 0], sizes = [1, 60], strides = [1, 1]} : vector<4x60xf32> to vector<1x60xf32>
    %29 = vector.broadcast %28 : vector<1x60xf32> to vector<8x60xf32>
    %30 = arith.mulf %27, %29 : vector<8x60xf32>
    %31 = arith.addf %25, %30 : vector<8x60xf32>
    %32 = vector.extract_strided_slice %1 {offsets = [1, 0], sizes = [1, 60], strides = [1, 1]} : vector<2x60xf32> to vector<1x60xf32>
    %33 = vector.broadcast %32 : vector<1x60xf32> to vector<8x60xf32>
    %34 = arith.addf %31, %33 : vector<8x60xf32>
    %cst_17 = arith.constant 0.000000e+00 : f32
    %35 = vector.broadcast %cst_17 : f32 to vector<8x60xf32>
    %36 = arith.maximumf %34, %35 : vector<8x60xf32>
    %c1_18 = arith.constant 1 : index
    %c0_19 = arith.constant 0 : index
    %c0_20 = arith.constant 0 : index
    %37 = vector.load %arg5[%c1_18, %c0_19, %c0_20] : memref<2x8x60xf32, #tpu.memory_space<vmem>>, vector<1x8x60xf32>
    %38 = vector.shape_cast %37 : vector<1x8x60xf32> to vector<8x60xf32>
    %39 = vector.shape_cast %36 : vector<8x60xf32> to vector<1x8x60xf32>
    tpu.vector_store %arg5[%c1_18, %c0_19, %c0_20], %39 {strides = array<i32>} : memref<2x8x60xf32, #tpu.memory_space<vmem>>, vector<1x8x60xf32>,
    return
  }
  func.func @transform_0(%arg0: i32, %arg1: i32) -> (i32, i32, i32) {
    %c0_i32 = arith.constant 0 : i32
    %c0_i32_0 = arith.constant 0 : i32
    return %c0_i32, %arg1, %arg0 : i32, i32, i32
  }
  func.func @transform_1(%arg0: i32, %arg1: i32) -> (i32, i32) {
    %c0_i32 = arith.constant 0 : i32
    %c0_i32_0 = arith.constant 0 : i32
    return %c0_i32, %arg0 : i32, i32
  }
  func.func @transform_2(%arg0: i32, %arg1: i32) -> (i32, i32) {
    %c0_i32 = arith.constant 0 : i32
    %c0_i32_0 = arith.constant 0 : i32
    return %c0_i32, %arg0 : i32, i32
  }
  func.func @transform_3(%arg0: i32, %arg1: i32) -> (i32, i32, i32) {
    %c0_i32 = arith.constant 0 : i32
    %c0_i32_0 = arith.constant 0 : i32
    return %c0_i32, %arg1, %arg0 : i32, i32, i32
  }
}

</mosaic_0001>

<bundles_post_ra>
// kernel: parallel_relu_models.1
= control target key start
LH: loop header
LB: loop body
LE: loop exit
PB: predicated region body
PF: predicated region fallthrough
CT: control target
= control target key end

     0   :  { %vm27_vm0 = vcmask 490496   ;;  %s86_s0 = inlined_call_operand.vmem [shape: f32[2,8,60], index: 0, kind: input, shape index: {}]   ;;  %s87_s1 = inlined_call_operand.vmem [shape: f32[4,60], index: 1, kind: input, shape index: {}]   ;;  %s88_s2 = inlined_call_operand.vmem [shape: f32[2,60], index: 2, kind: input, shape index: {}]   ;;  %s89_s3 = inlined_call_operand.vmem [shape: f32[2,8,60], index: 3, kind: output, shape index: {}]  }
   0x1   :  { %v14_v0 = vld [vmem:[%s87_s1] sm:$0xf]  ;;  %v45_v4 = vld [vmem:[%s86_s0 + $0x8] sm:$0xff] }
   0x2   :  { %v15_v1 = vld [vmem:[%s88_s2] sm:$0x3]  ;;  %v17_v3 = vperm.slane %v14_v0, 0  ;;  %v21_v5 = vperm.slane %v14_v0, 2  ;;  %v30_v6 = vperm.slane %v14_v0, 1  ;;  %v33_v7 = vperm.slane %v14_v0, 3 }
   0x3   :  { %v16_v2 = vld [vmem:[%s86_s0] sm:$0xff]  ;;  %v24_v10 = vperm.slane %v15_v1, 0  ;;  %v36_v13 = vperm.slane %v15_v1, 1 }
   0x4   :  { %v18_v8 = vmul.f32 %v17_v3, %v16_v2  ;;  %v22_v9 = vmul.f32 %v45_v4, %v21_v5  ;;  %v31_v11 = vmul.f32 %v30_v6, %v16_v2  ;;  %v34_v12 = vmul.f32 %v45_v4, %v33_v7 }
   0x6   :  { %v23_v14 = vadd.f32 %v22_v9, %v18_v8  ;;  %v35_v15 = vadd.f32 %v34_v12, %v31_v11 }
   0x8   :  { %v25_v16 = vadd.f32 %v24_v10, %v23_v14  ;;  %v37_v17 = vadd.f32 %v36_v13, %v35_v15 }
   0xa   :  { %v26_v18 = vmax.f32 %v25_v16, 0.0  ;;  %v38_v19 = vmax.f32 %v37_v17, 0.0 }
   0xc   :  { %28 = vst.msk [vmem:[%s89_s3] sm:$0xff] %vm27_vm0, %v26_v18 }
   0xd   :  { %47 = vst.msk [vmem:[%s89_s3 + $0x8] sm:$0xff] %vm27_vm0, %v38_v19 }

</bundles_post_ra>
